<compile_context>
chip_gen: v5e
topology: v5e:2x2
jax: 0.10.0
libtpu: 0.0.40
codegen_flags: <defaults>
</compile_context>

<pallas_src>
import functools

import jax
import jax.numpy as jnp
from jax.experimental import pallas as pl
from jax.experimental.pallas import tpu as pltpu


# ---------------------------------------------------------------------------
# helpers
# ---------------------------------------------------------------------------
def _pad_to(n: int, m: int) -> int:
    return ((n + m - 1) // m) * m


def _pad2d(x, shape):
    pr, pc = shape[0] - x.shape[0], shape[1] - x.shape[1]
    if pr == 0 and pc == 0:
        return x
    return jnp.pad(x, ((0, pr), (0, pc)))


def _choose_tiles(num_nodes: int):
    """Pick (n_p, tm, tk): padded node count, row tile, reduction tile.

    * 512-wide tiles for large graphs (mem-bound roofline ~85% vs ~63% at 256)
    * keep >= 2 row tiles whenever the padded graph allows it (v7x megacore balance)
    * 128 for tiny graphs to avoid pure padding work
    """
    tile = 128 if num_nodes <= 256 else 512
    n_p = _pad_to(num_nodes, tile)
    tm = tile
    tk = tile
    if n_p // tm < 2 and n_p >= 256:
        tm = n_p // 2  # n_p is a multiple of 512 here -> tm is a multiple of 256
    return n_p, tm, tk


# ---------------------------------------------------------------------------
# Kernel 1: feature transform  XW = X @ W   (computed once per layer)
# ---------------------------------------------------------------------------
def _transform_kernel(x_ref, w_ref, o_ref):
    o_ref[...] = jnp.dot(
        x_ref[...], w_ref[...], preferred_element_type=jnp.float32
    ).astype(o_ref.dtype)


def feature_transform(x_p, w_p, *, tm):
    n_p, f_in_p = x_p.shape
    f_out_p = w_p.shape[1]
    flops = 2 * n_p * f_in_p * f_out_p
    bytes_accessed = 2 * (n_p * f_in_p + f_in_p * f_out_p + n_p * f_out_p)
    return pl.pallas_call(
        _transform_kernel,
        out_shape=jax.ShapeDtypeStruct((n_p, f_out_p), jnp.bfloat16),
        grid=(n_p // tm,),
        in_specs=[
            pl.BlockSpec((tm, f_in_p), lambda i: (i, 0)),
            pl.BlockSpec((f_in_p, f_out_p), lambda i: (0, 0)),
        ],
        out_specs=pl.BlockSpec((tm, f_out_p), lambda i: (i, 0)),
        compiler_params=pltpu.CompilerParams(dimension_semantics=("parallel",)),
        cost_estimate=pl.CostEstimate(
            flops=flops, transcendentals=0, bytes_accessed=bytes_accessed
        ),
    )(x_p, w_p)


# ---------------------------------------------------------------------------
# Kernel 2: aggregation  out = A_hat @ XW + b  [; ReLU]
#   grid = (row tiles, k tiles); K (reduction) axis last, "arbitrary";
#   f32 accumulator in VMEM scratch; bias + ReLU only in the k==last finalize.
#   Two variants: XW fully VMEM-resident (preferred) or streamed per k-slice.
# ---------------------------------------------------------------------------
def _aggregate_kernel_resident(a_ref, xw_ref, b_ref, o_ref, acc_ref, *, tk, apply_relu):
    k = pl.program_id(1)

    @pl.when(k == 0)
    def _():
        acc_ref[...] = jnp.zeros_like(acc_ref)

    start = pl.multiple_of(k * tk, tk)
    acc_ref[...] += jnp.dot(
        a_ref[...], xw_ref[pl.ds(start, tk), :], preferred_element_type=jnp.float32
    )

    @pl.when(k == pl.num_programs(1) - 1)
    def _():
        out = acc_ref[...] + b_ref[...]          # bias once, in f32
        if apply_relu:
            out = jnp.maximum(out, 0.0)          # ReLU in f32 before the final cast
        o_ref[...] = out.astype(o_ref.dtype)


def _aggregate_kernel_streamed(a_ref, xw_ref, b_ref, o_ref, acc_ref, *, apply_relu):
    k = pl.program_id(1)

    @pl.when(k == 0)
    def _():
        acc_ref[...] = jnp.zeros_like(acc_ref)

    acc_ref[...] += jnp.dot(
        a_ref[...], xw_ref[...], preferred_element_type=jnp.float32
    )

    @pl.when(k == pl.num_programs(1) - 1)
    def _():
        out = acc_ref[...] + b_ref[...]
        if apply_relu:
            out = jnp.maximum(out, 0.0)
        o_ref[...] = out.astype(o_ref.dtype)


# Per-buffer cap for making XW resident (Pallas may still double-buffer the block,
# so the effective VMEM cost is up to 2x this).  N=8192, F=128 bf16 is only 2 MiB.
_XW_RESIDENT_BYTES = 12 * 1024 * 1024


def aggregate(a_p, xw_p, b_p, *, apply_relu, out_dtype, tm, tk):
    n_p = a_p.shape[0]
    f_out_p = xw_p.shape[1]
    a_itemsize = jnp.dtype(a_p.dtype).itemsize
    xw_itemsize = jnp.dtype(xw_p.dtype).itemsize
    out_itemsize = jnp.dtype(out_dtype).itemsize

    xw_total_bytes = n_p * f_out_p * xw_itemsize
    resident = xw_total_bytes <= _XW_RESIDENT_BYTES

    if resident:
        kernel = functools.partial(
            _aggregate_kernel_resident, tk=tk, apply_relu=apply_relu
        )
        # Constant index_map -> DMA'd once, stays VMEM-resident across the grid.
        xw_spec = pl.BlockSpec((n_p, f_out_p), lambda i, k: (0, 0))
        xw_hbm_reads = 1
        xw_vmem_bytes = 2 * xw_total_bytes
    else:
        kernel = functools.partial(_aggregate_kernel_streamed, apply_relu=apply_relu)
        xw_spec = pl.BlockSpec((tk, f_out_p), lambda i, k: (k, 0))
        xw_hbm_reads = n_p // tm                      # re-fetched once per row tile
        xw_vmem_bytes = 2 * tk * f_out_p * xw_itemsize

    # Explicit VMEM budget (double-buffered A tiles + XW + f32 acc + outputs + bias),
    # capped at 48 MiB so the plan stays safe on v7x (64 MiB physical per TC).
    vmem_est = (
        2 * tm * tk * a_itemsize
        + xw_vmem_bytes
        + tm * f_out_p * 4
        + 2 * tm * f_out_p * out_itemsize
        + 2 * f_out_p * 4
    )
    vmem_limit = min(
        48 * 1024 * 1024,
        max(32 * 1024 * 1024, (vmem_est * 3) // 2 + (1 << 20)),
    )

    flops = 2 * n_p * n_p * f_out_p
    bytes_accessed = (
        n_p * n_p * a_itemsize                        # A_hat, read once
        + xw_hbm_reads * n_p * f_out_p * xw_itemsize  # XW, resident (1x) or streamed (N/tm x)
        + n_p * f_out_p * out_itemsize                # output
        + f_out_p * 4                                 # bias
    )

    return pl.pallas_call(
        kernel,
        out_shape=jax.ShapeDtypeStruct((n_p, f_out_p), out_dtype),
        grid=(n_p // tm, n_p // tk),
        in_specs=[
            pl.BlockSpec((tm, tk), lambda i, k: (i, k)),      # A_hat tile
            xw_spec,                                          # XW (resident or k-slice)
            pl.BlockSpec((1, f_out_p), lambda i, k: (0, 0)),  # bias
        ],
        out_specs=pl.BlockSpec((tm, f_out_p), lambda i, k: (i, 0)),
        scratch_shapes=[pltpu.VMEM((tm, f_out_p), jnp.float32)],
        compiler_params=pltpu.CompilerParams(
            dimension_semantics=("parallel", "arbitrary"),
            vmem_limit_bytes=int(vmem_limit),
        ),
        cost_estimate=pl.CostEstimate(
            flops=flops, transcendentals=0, bytes_accessed=bytes_accessed
        ),
    )(a_p, xw_p, b_p.reshape(1, f_out_p))


# ---------------------------------------------------------------------------
# Glue: PyG-style gcn_norm -> dense normalized adjacency with self-loops.
# Build ONCE per static graph; do not rebuild inside every forward.
# ---------------------------------------------------------------------------
def build_normalized_adjacency(edge_index, edge_weight, num_nodes):
    src = edge_index[0]
    dst = edge_index[1]
    loops = jnp.arange(num_nodes, dtype=edge_index.dtype)
    src = jnp.concatenate([src, loops])
    dst = jnp.concatenate([dst, loops])
    w = jnp.concatenate([edge_weight, jnp.ones((num_nodes,), edge_weight.dtype)])

    # A[dst, src] = w   (message flows source -> target); duplicate edges accumulate.
    adj = jnp.zeros((num_nodes, num_nodes), jnp.float32).at[dst, src].add(w)
    deg = adj.sum(axis=1)
    deg_inv_sqrt = jnp.where(deg > 0, jax.lax.rsqrt(deg), 0.0)
    return deg_inv_sqrt[:, None] * adj * deg_inv_sqrt[None, :]


def prepare_padded_adjacency(edge_index, edge_weight, num_nodes, n_p):
    a_hat = build_normalized_adjacency(edge_index, edge_weight, num_nodes)
    return _pad2d(a_hat, (n_p, n_p)).astype(jnp.bfloat16)


# ---------------------------------------------------------------------------
# Model: deterministic parameter init + forward
# ---------------------------------------------------------------------------
def init_gcn_params(key, num_layers, input_dim, hidden_dim, num_classes):
    dims = [input_dim] + [hidden_dim] * (num_layers - 1) + [num_classes]
    params = []
    for i in range(num_layers):
        key, wk = jax.random.split(key)
        fan_in, fan_out = dims[i], dims[i + 1]
        limit = (6.0 / (fan_in + fan_out)) ** 0.5
        w = jax.random.uniform(wk, (fan_in, fan_out), jnp.float32, -limit, limit)
        b = jnp.zeros((fan_out,), jnp.float32)
        params.append((w, b))
    return params


def gcn_forward(params, x, a_p, *, tm, tk, dropout_p=0.5):
    """x: (num_nodes, input_dim) f32; a_p: (n_p, n_p) bf16 padded normalized adjacency."""
    # eval mode: F.dropout(training=False) is the identity; dropout_p unused.
    del dropout_p
    n_p = a_p.shape[0]
    num_nodes = x.shape[0]
    num_classes = params[-1][0].shape[1]

    f_in_p = _pad_to(x.shape[1], 128)
    x_p = _pad2d(x, (n_p, f_in_p)).astype(jnp.bfloat16)

    num_layers = len(params)
    out = None
    for i, (w, b) in enumerate(params):
        f_in, f_out = w.shape
        f_in_pad, f_out_pad = _pad_to(f_in, 128), _pad_to(f_out, 128)
        w_p = _pad2d(w, (f_in_pad, f_out_pad)).astype(jnp.bfloat16)
        b_p = jnp.pad(b, (0, f_out_pad - f_out)).astype(jnp.float32)
        is_last = i == num_layers - 1

        xw = feature_transform(x_p, w_p, tm=tm)                  # once per layer
        out = aggregate(
            a_p, xw, b_p,
            apply_relu=not is_last,
            out_dtype=jnp.float32 if is_last else jnp.bfloat16,  # bf16 intermediates
            tm=tm, tk=tk,
        )
        x_p = out

    return out[:num_nodes, :num_classes]


# ---------------------------------------------------------------------------
if __name__ == "__main__":
    NUM_NODES = 16
    NUM_EDGES = 40
    INPUT_DIM = 32
    HIDDEN_DIM = 32
    NUM_CLASSES = 8
    NUM_LAYERS = 2

    key = jax.random.PRNGKey(0)
    kx, ke, kw, kp = jax.random.split(key, 4)

    x = jax.random.normal(kx, (NUM_NODES, INPUT_DIM), jnp.float32)
    edge_index = jax.random.randint(ke, (2, NUM_EDGES), 0, NUM_NODES, jnp.int32)
    edge_weight = jax.random.uniform(kw, (NUM_EDGES,), jnp.float32, 0.5, 1.5)

    params = init_gcn_params(kp, NUM_LAYERS, INPUT_DIM, HIDDEN_DIM, NUM_CLASSES)

    # Static graph: build + pad the normalized adjacency once, reuse across forwards.
    n_p, tm, tk = _choose_tiles(NUM_NODES)
    a_p = prepare_padded_adjacency(edge_index, edge_weight, NUM_NODES, n_p)

    out = gcn_forward(params, x, a_p, tm=tm, tk=tk)
    out = jax.block_until_ready(out)
    assert out.shape == (NUM_NODES, NUM_CLASSES)
    assert jnp.all(jnp.isfinite(out))
    print("KERNEL_OK")
</pallas_src>

<mosaic_0001>
module attributes {stable_mosaic.version = 11 : i64} {
  func.func @_transform_kernel(%arg0: i32, %arg1: memref<128x128xbf16, #tpu.memory_space<vmem>>, %arg2: memref<128x128xbf16, #tpu.memory_space<vmem>>, %arg3: memref<128x128xbf16, #tpu.memory_space<vmem>>) attributes {dimension_semantics = [#tpu.dimension_semantics<parallel>], iteration_bounds = array<i64: 1>, scalar_prefetch = 0 : i64, scratch_operands = 0 : i64, tpu.core_type = #tpu.core_type<tc>, window_params = [{transform_indices = @transform_0, window_bounds = array<i64: 128, 128>}, {pipeline_mode = #tpu.pipeline_mode<synchronous>, transform_indices = @transform_1, window_bounds = array<i64: 128, 128>}, {transform_indices = @transform_2, window_bounds = array<i64: 128, 128>}]} {
    %c0 = arith.constant 0 : index
    %c0_0 = arith.constant 0 : index
    %0 = vector.load %arg1[%c0, %c0_0] : memref<128x128xbf16, #tpu.memory_space<vmem>>, vector<128x128xbf16>
    %c0_1 = arith.constant 0 : index
    %c0_2 = arith.constant 0 : index
    %1 = vector.load %arg2[%c0_1, %c0_2] : memref<128x128xbf16, #tpu.memory_space<vmem>>, vector<128x128xbf16>
    %cst = arith.constant dense<0.000000e+00> : vector<128x128xf32>
    %2 = tpu.matmul %0, %1, %cst {dimension_numbers = #tpu.dot_dimension_numbers<[1], [0], [0], [1], [0, 0, 1, 1], [], []>} : vector<128x128xbf16>, vector<128x128xbf16>, vector<128x128xf32> -> vector<128x128xf32>
    %3 = arith.truncf %2 : vector<128x128xf32> to vector<128x128xbf16>
    %c0_3 = arith.constant 0 : index
    %c0_4 = arith.constant 0 : index
    %4 = vector.load %arg3[%c0_3, %c0_4] : memref<128x128xbf16, #tpu.memory_space<vmem>>, vector<128x128xbf16>
    tpu.vector_store %arg3[%c0_3, %c0_4], %3 {strides = array<i32>} : memref<128x128xbf16, #tpu.memory_space<vmem>>, vector<128x128xbf16>,
    return
  }
  func.func @transform_0(%arg0: i32) -> (i32, i32) {
    %c0_i32 = arith.constant 0 : i32
    %c0_i32_0 = arith.constant 0 : i32
    return %arg0, %c0_i32 : i32, i32
  }
  func.func @transform_1(%arg0: i32) -> (i32, i32) {
    %c0_i32 = arith.constant 0 : i32
    %c0_i32_0 = arith.constant 0 : i32
    %c0_i32_1 = arith.constant 0 : i32
    return %c0_i32, %c0_i32_0 : i32, i32
  }
  func.func @transform_2(%arg0: i32) -> (i32, i32) {
    %c0_i32 = arith.constant 0 : i32
    %c0_i32_0 = arith.constant 0 : i32
    return %arg0, %c0_i32 : i32, i32
  }
}

</mosaic_0001>

<bundles_post_ra>
// kernel: tpu_custom_call.1
= control target key start
LH: loop header
LB: loop body
LE: loop exit
PB: predicated region body
PF: predicated region fallthrough
CT: control target
= control target key end

     0   :  { %7 = vsyncpa [#allocation3], 0  ;;  %s545_s0 = inlined_call_operand.hbm [shape: bf16[128,128], index: 0, kind: input, shape index: {}]   ;;  %s546_s1 = inlined_call_operand.hbm [shape: bf16[128,128], index: 1, kind: input, shape index: {}]   ;;  %s547_s2 = inlined_call_operand.hbm [shape: bf16[128,128], index: 2, kind: output, shape index: {}]  }
   0x1   :  { %8 = vsyncpa [#allocation6], 0 }
   0x2   :  { %9 = vsyncpa [#allocation4], 0  ;;  %s14_s11 = sshll.u32 %s545_s0, 4  ;;  %s507_s12 = smov [#allocation2]   ;;  %s15_s11 = int_to_ptr.hbm [resolvable:$true] %s14_s11 }
   0x3   :  { %s16_s13 = sshll.u32 %s507_s12, 4  ;;  %s27_s16 = sshll.u32 %s546_s1, 4  ;;  %s17_s13 = int_to_ptr.vmem [resolvable:$true] %s16_s13  ;;  %s28_s16 = int_to_ptr.hbm [resolvable:$true] %s27_s16 }
   0x4   :  { %s508_s17 = smov 64   ;;  %s509_s18 = smov 4  }
   0x5   :  { %22 = dma.hbm_to_vmem [thread:$0]  %s15_s11, 1024, %s17_s13, [#allocation3], %s508_s17, %s508_s17, %s509_s18  }
   0x6   :  { %s510_s19 = smov [#allocation5]  }
   0x7   :  { %s29_s20 = sshll.u32 %s510_s19, 4  ;;  %s30_s20 = int_to_ptr.vmem [resolvable:$true] %s29_s20 }
   0x8   :  { %35 = dma.hbm_to_vmem [thread:$0]  %s28_s16, 1024, %s30_s20, [#allocation6], %s508_s17, %s508_s17, %s509_s18  }
   0x9   :  { %501 = dma.done.wait [#allocation3], 1024  }
   0xa   :  { %502 = vsyncadd [#allocation3], 4294966272 }
   0xb   :  { %503 = dma.done.wait [#allocation6], 1024  }
   0xc   :  { %504 = vsyncadd [#allocation6], 4294966272  ;;  %v352_v0 = vld [vmem:[#allocation5 + $0x38] sm:$0xff]  ;;  %v351_v1 = vld [vmem:[#allocation5 + $0x30] sm:$0xff]  ;;  %s511_s0 = smov [#allocation7]   ;;  %s259_s23 = sshll.u32 %s547_s2, 4  ;;  %s260_s23 = int_to_ptr.hbm [resolvable:$true] %s259_s23 }
   0xd   :  { %172 = vmatpush.bf16.msra.mxu0 %v352_v0  ;;  %400 = vmatpush.bf16.msra.mxu1 %v352_v0  ;;  %v350_v2 = vld [vmem:[#allocation5 + $0x28] sm:$0xff]  ;;  %v349_v3 = vld [vmem:[#allocation5 + $0x20] sm:$0xff]  ;;  %v348_v4 = vld [vmem:[#allocation5 + $0x18] sm:$0xff]  ;;  %s257_s1 = sshll.u32 %s511_s0, 4  ;;  %s258_s1 = int_to_ptr.vmem [resolvable:$true] %s257_s1 }
   0xe   :  { %401 = vmatpush.bf16.msra.mxu2 %v352_v0  ;;  %402 = vmatpush.bf16.msra.mxu3 %v352_v0  ;;  %v347_v5 = vld [vmem:[#allocation5 + $0x10] sm:$0xff]  ;;  %v346_v6 = vld [vmem:[#allocation5 + $0x8] sm:$0xff]  ;;  %v345_v7 = vld [vmem:[#allocation5] sm:$0xff] }
   0xf   :  { %v337_v8 = vld [vmem:[#allocation2] sm:$0xff]  ;;  %v339_v9 = vld [vmem:[#allocation2 + $0x10] sm:$0xff]  ;;  %v338_v12 = vld [vmem:[#allocation2 + $0x8] sm:$0xff] }
  0x10   :  { %v341_v10 = vld [vmem:[#allocation2 + $0x20] sm:$0xff]  ;;  %v343_v11 = vld [vmem:[#allocation2 + $0x30] sm:$0xff]  ;;  %v340_v13 = vld [vmem:[#allocation2 + $0x18] sm:$0xff] }
  0x11   :  { %173 = vmatpush.bf16.msra.mxu0 %v351_v1  ;;  %403 = vmatpush.bf16.msra.mxu1 %v351_v1  ;;  %v342_v14 = vld [vmem:[#allocation2 + $0x28] sm:$0xff]  ;;  %v344_v15 = vld [vmem:[#allocation2 + $0x38] sm:$0xff] }
  0x12   :  { %404 = vmatpush.bf16.msra.mxu2 %v351_v1  ;;  %405 = vmatpush.bf16.msra.mxu3 %v351_v1 }
  0x15   :  { %174 = vmatpush.bf16.msra.mxu0 %v350_v2  ;;  %406 = vmatpush.bf16.msra.mxu1 %v350_v2 }
  0x16   :  { %407 = vmatpush.bf16.msra.mxu2 %v350_v2  ;;  %408 = vmatpush.bf16.msra.mxu3 %v350_v2 }
  0x19   :  { %175 = vmatpush.bf16.msra.mxu0 %v349_v3  ;;  %409 = vmatpush.bf16.msra.mxu1 %v349_v3 }
  0x1a   :  { %410 = vmatpush.bf16.msra.mxu2 %v349_v3  ;;  %411 = vmatpush.bf16.msra.mxu3 %v349_v3 }
  0x1d   :  { %176 = vmatpush.bf16.msra.mxu0 %v348_v4  ;;  %412 = vmatpush.bf16.msra.mxu1 %v348_v4 }
  0x1e   :  { %413 = vmatpush.bf16.msra.mxu2 %v348_v4  ;;  %414 = vmatpush.bf16.msra.mxu3 %v348_v4 }
  0x21   :  { %177 = vmatpush.bf16.msra.mxu0 %v347_v5  ;;  %415 = vmatpush.bf16.msra.mxu1 %v347_v5 }
  0x22   :  { %416 = vmatpush.bf16.msra.mxu2 %v347_v5  ;;  %417 = vmatpush.bf16.msra.mxu3 %v347_v5 }
  0x25   :  { %178 = vmatpush.bf16.msra.mxu0 %v346_v6  ;;  %418 = vmatpush.bf16.msra.mxu1 %v346_v6 }
  0x26   :  { %419 = vmatpush.bf16.msra.mxu2 %v346_v6  ;;  %420 = vmatpush.bf16.msra.mxu3 %v346_v6 }
  0x29   :  { %179 = vmatpush.bf16.msra.mxu0 %v345_v7  ;;  %421 = vmatpush.bf16.msra.mxu1 %v345_v7 }
  0x2a   :  { %422 = vmatpush.bf16.msra.mxu2 %v345_v7  ;;  %423 = vmatpush.bf16.msra.mxu3 %v345_v7 }
  0x2c   :  { %180 = vmatmul.bf16.vlgmr.msra.gmra.mxu0 %v337_v8  ;;  %190 = vmatmul.bf16.vlgmr.msra.gmra.mxu1 %v339_v9 }
  0x2d   :  { %200 = vmatmul.bf16.vlgmr.msra.gmra.mxu2 %v341_v10  ;;  %210 = vmatmul.bf16.vlgmr.msra.gmra.mxu3 %v343_v11 }
  0x3c   :  { %185 = vmatmul.bf16.gmra.mxu0 %v338_v12  ;;  %195 = vmatmul.bf16.gmra.mxu1 %v340_v13 }
  0x3d   :  { %205 = vmatmul.bf16.gmra.mxu2 %v342_v14  ;;  %215 = vmatmul.bf16.gmra.mxu3 %v344_v15 }
  0xa9   :  { %v181_v16 = vpop.f32.mrf.mxu0  ;;  %v191_v17 = vpop.f32.mrf.mxu1 }
  0xb0   :  { %v201_v18 = vpop.f32.mrf.mxu2  ;;  %v211_v19 = vpop.f32.mrf.mxu3 }
  0xb1   :  { %v183_v20 = vpop.f32.mrf.mxu0  ;;  %v193_v21 = vpop.f32.mrf.mxu1 }
  0xb2   :  { %v356_v22 = vpack.c.bf16 %v183_v20, %v181_v16  ;;  %v366_v23 = vpack.c.bf16 %v193_v21, %v191_v17 }
  0xb4   :  { %357 = vst [vmem:[#allocation7] sm:$0xff] %v356_v22  }
  0xb5   :  { %394 = vst [vmem:[#allocation7 + $0x10] sm:$0xff] %v366_v23  }
  0xb8   :  { %v203_v24 = vpop.f32.mrf.mxu2  ;;  %v213_v25 = vpop.f32.mrf.mxu3 }
  0xb9   :  { %v376_v26 = vpack.c.bf16 %v203_v24, %v201_v18  ;;  %v386_v27 = vpack.c.bf16 %v213_v25, %v211_v19  ;;  %v186_v28 = vpop.f32.mrf.mxu0  ;;  %v196_v29 = vpop.f32.mrf.mxu1 }
  0xbb   :  { %396 = vst [vmem:[#allocation7 + $0x20] sm:$0xff] %v376_v26  }
  0xbc   :  { %398 = vst [vmem:[#allocation7 + $0x30] sm:$0xff] %v386_v27  }
  0xc0   :  { %v206_v30 = vpop.f32.mrf.mxu2  ;;  %v216_v31 = vpop.f32.mrf.mxu3 }
  0xc1   :  { %v188_v32 = vpop.f32.mrf.mxu0  ;;  %v198_v33 = vpop.f32.mrf.mxu1 }
  0xc2   :  { %v361_v34 = vpack.c.bf16 %v188_v32, %v186_v28  ;;  %v371_v35 = vpack.c.bf16 %v198_v33, %v196_v29 }
  0xc4   :  { %393 = vst [vmem:[#allocation7 + $0x8] sm:$0xff] %v361_v34  }
  0xc5   :  { %395 = vst [vmem:[#allocation7 + $0x18] sm:$0xff] %v371_v35  }
  0xc8   :  { %v208_v36 = vpop.f32.mrf.mxu2  ;;  %v218_v37 = vpop.f32.mrf.mxu3 }
  0xc9   :  { %v381_v38 = vpack.c.bf16 %v208_v36, %v206_v30  ;;  %v391_v39 = vpack.c.bf16 %v218_v37, %v216_v31 }
  0xcb   :  { %397 = vst [vmem:[#allocation7 + $0x28] sm:$0xff] %v381_v38  }
  0xcc   :  { %399 = vst [vmem:[#allocation7 + $0x38] sm:$0xff] %v391_v39  }
  0xcd   :  { %265 = dma.vmem_to_hbm [thread:$0]  %s258_s1, 1024, %s260_s23, [#allocation4], %s508_s17, %s508_s17, %s509_s18  }
  0xce   :  { %505 = dma.done.wait [#allocation4], 1024  }
  0xcf   :  { %506 = vsyncadd [#allocation4], 4294966272 }
  0xd0   :  { %270 = vsyncpa [#allocation3], 1 }
  0xd1   :  { %271 = vsyncpa [#allocation6], 1 }
  0xd2   :  { %272 = vsyncpa [#allocation4], 1 }

</bundles_post_ra>
